<compile_context>
chip_gen: v6e
topology: v6e:2x2x1
jax: 0.10.0
libtpu: 0.0.40
codegen_flags: <defaults>
</compile_context>

<pallas_src>
import functools
import math

import jax
import jax.numpy as jnp
from jax.experimental import pallas as pl
from jax.experimental.pallas import tpu as pltpu


def _roundup(a, b):
    return -(-a // b) * b


def _conv_bn_relu_kernel(x_ref, halo_ref, w_ref, shift_ref, o_ref, xbuf_ref, *,
                         K, dilation, stride):
    """One (batch, time-tile) grid step for K > 1.

    x_ref    : (C_in, t_tile)            current tile (compute dtype)
    halo_ref : (C_in, halo_blk)          lane-dense halo (next halo_blk columns)
    w_ref    : (K, C_out, C_in)          BN-scale-folded taps (compute dtype)
    shift_ref: (C_out, 1)                BN shift (f32)
    o_ref    : (C_out, out_tile)         output tile (lane-dense, unmasked store)
    xbuf_ref : (C_in, t_tile + halo_blk) compute-dtype assembly scratch
    """
    t_tile = x_ref.shape[-1]
    out_tile = o_ref.shape[-1]

    # Assemble the extended window once, in compute dtype (no f32 round-trip,
    # no concatenate temporaries -- two aligned stores into a VMEM scratch).
    xbuf_ref[:, :t_tile] = x_ref[...]
    xbuf_ref[:, t_tile:] = halo_ref[...]

    # K shallow MXU matmuls accumulated in f32.  Windows are read directly from
    # the scratch ref; when stride > 1 the read is strided, so only the needed
    # output columns are ever computed.
    acc = None
    for k in range(K):
        start = k * dilation
        if stride > 1:
            win = xbuf_ref[:, pl.ds(start, out_tile, stride)]
        else:
            win = xbuf_ref[:, pl.ds(start, out_tile)]
        part = jnp.dot(w_ref[k], win, preferred_element_type=jnp.float32)
        acc = part if acc is None else acc + part

    y = acc + shift_ref[...]                       # BN shift (f32)
    o_ref[...] = jnp.maximum(y, 0.0).astype(o_ref.dtype)   # ReLU


def _conv_bn_relu_kernel_k1(x_ref, w_ref, shift_ref, o_ref, *, stride):
    """K == 1: no halo input and no assembly scratch at all."""
    out_tile = o_ref.shape[-1]
    if stride > 1:
        win = x_ref[:, pl.ds(0, out_tile, stride)]
    else:
        win = x_ref[...]
    acc = jnp.dot(w_ref[0], win, preferred_element_type=jnp.float32)
    o_ref[...] = jnp.maximum(acc + shift_ref[...], 0.0).astype(o_ref.dtype)


def basic_conv_forward(x, weight, gamma, beta, running_mean, running_var, *,
                       stride=1, padding=0, dilation=1, eps=1e-5,
                       n_tile=1024, compute_dtype=jnp.bfloat16,
                       out_dtype=jnp.float32):
    """x: (B, C_in, T) f32; weight: (C_out, C_in, K) f32 -> (B, C_out, T_out)."""
    B, C_in, T = x.shape
    C_out, C_in_w, K = weight.shape
    if C_in_w != C_in:
        raise NotImplementedError("groups != 1 not supported")  # TODO(synk): grouped conv

    halo = dilation * (K - 1)
    T_pad = T + 2 * padding
    T_dense = T_pad - halo
    assert T_dense >= 1, "invalid conv geometry"
    T_out = (T_dense - 1) // stride + 1

    in_bytes = jnp.dtype(compute_dtype).itemsize
    out_bytes = jnp.dtype(out_dtype).itemsize

    # ---- output-lane tiling -------------------------------------------------
    if K > 1:
        halo_blk = _roundup(halo, 128)                    # lane-dense halo width
        # t_tile = out_tile*stride must be a multiple of halo_blk so the halo
        # BlockSpec index is an integer block index.
        out_unit = 128 * (halo_blk // math.gcd(128 * stride, halo_blk))
    else:
        halo_blk = 0
        out_unit = 128

    out_tile = max(out_unit, (int(n_tile) // out_unit) * out_unit)
    out_tile = min(out_tile, _roundup(T_out, out_unit))

    def vmem_budget(ot):
        tt = ot * stride
        ci, co = _roundup(C_in, 8), _roundup(C_out, 8)
        byt = 2 * ci * tt * in_bytes                           # x block (double-buffered)
        byt += 2 * co * ot * out_bytes                         # out block (double-buffered)
        byt += 2 * K * co * max(C_in, 128) * in_bytes          # folded weights
        byt += 2 * co * 128 * 4                                # BN shift
        byt += co * ot * 4 + ci * ot * in_bytes                # f32 acc + window vregs (rough)
        if K > 1:
            byt += 2 * ci * halo_blk * in_bytes                # halo block
            byt += ci * (tt + halo_blk) * in_bytes             # assembly scratch
        return byt

    try:   # v7x: 64 MiB physical VMEM per core; v5e/v6e: 128 MiB.
        vmem_cap = int(pltpu.get_tpu_info().vmem_capacity_bytes)
    except Exception:
        vmem_cap = 64 << 20
    budget_cap = max(vmem_cap // 4, 8 << 20)
    while out_tile > out_unit and vmem_budget(out_tile) > budget_cap:
        out_tile -= out_unit

    num_tiles = pl.cdiv(T_out, out_tile)
    if B * num_tiles < 2:          # keep both v7x TensorCores busy when possible
        split = _roundup(pl.cdiv(T_out, 2), out_unit)
        if split < out_tile:
            out_tile = split
            num_tiles = pl.cdiv(T_out, out_tile)

    t_tile = out_tile * stride
    total_cols = num_tiles * t_tile + halo_blk

    # ---- glue: ONE fused cast+pad pass; all layout handled by BlockSpecs ----
    right = total_cols - padding - T
    assert right >= 0
    x_ext = jnp.pad(x.astype(compute_dtype), ((0, 0), (0, 0), (padding, right)))

    scale = gamma / jnp.sqrt(running_var + eps)                          # (C_out,)
    shift = (beta - running_mean * scale).reshape(C_out, 1).astype(jnp.float32)
    w_taps = jnp.transpose(weight * scale[:, None, None], (2, 0, 1))     # (K, C_out, C_in)
    w_taps = w_taps.astype(compute_dtype)

    cost = pl.CostEstimate(
        flops=int(2 * B * num_tiles * out_tile * K * C_out * C_in),
        transcendentals=0,
        bytes_accessed=int(B * C_in * total_cols * in_bytes
                           + B * num_tiles * C_in * halo_blk * in_bytes
                           + w_taps.size * in_bytes + shift.size * 4
                           + B * num_tiles * out_tile * C_out * out_bytes))

    x_spec = pl.BlockSpec((None, C_in, t_tile), lambda b, t: (b, 0, t))
    w_spec = pl.BlockSpec((K, C_out, C_in), lambda b, t: (0, 0, 0))
    s_spec = pl.BlockSpec((C_out, 1), lambda b, t: (0, 0))
    o_spec = pl.BlockSpec((None, C_out, out_tile), lambda b, t: (b, 0, t))

    if K > 1:
        ratio = t_tile // halo_blk
        # Lane-dense halo: a second window into the SAME padded input array,
        # starting right where the current tile ends.
        halo_spec = pl.BlockSpec((None, C_in, halo_blk),
                                 lambda b, t: (b, 0, (t + 1) * ratio))
        kernel = functools.partial(_conv_bn_relu_kernel,
                                   K=K, dilation=dilation, stride=stride)
        in_specs = [x_spec, halo_spec, w_spec, s_spec]
        scratch = [pltpu.VMEM((C_in, t_tile + halo_blk), compute_dtype)]
        operands = (x_ext, x_ext, w_taps, shift)
    else:
        kernel = functools.partial(_conv_bn_relu_kernel_k1, stride=stride)
        in_specs = [x_spec, w_spec, s_spec]
        scratch = []
        operands = (x_ext, w_taps, shift)

    vmem_limit = int(min(max(2 * vmem_budget(out_tile) + (1 << 20), 16 << 20),
                         64 << 20, 3 * vmem_cap // 4))

    out_padded = pl.pallas_call(
        kernel,
        out_shape=jax.ShapeDtypeStruct((B, C_out, num_tiles * out_tile), out_dtype),
        grid_spec=pltpu.PrefetchScalarGridSpec(
            num_scalar_prefetch=0,
            grid=(B, num_tiles),
            in_specs=in_specs,
            out_specs=o_spec,
            scratch_shapes=scratch),
        compiler_params=pltpu.CompilerParams(
            dimension_semantics=("parallel", "parallel"),
            vmem_limit_bytes=vmem_limit),
        cost_estimate=cost,
    )(*operands)

    # Tail trim only (no reshape/transpose pass); identity when T_out is a
    # multiple of out_tile.
    return out_padded[:, :, :T_out]


def _reference_fused(x, w_eff, shift, *, stride, padding, dilation):
    """Conv1d with BN-folded weights + shift + ReLU (pure JAX reference)."""
    y = jax.lax.conv_general_dilated(
        x, w_eff,
        window_strides=(stride,),
        padding=[(padding, padding)],
        rhs_dilation=(dilation,),
        dimension_numbers=("NCH", "OIH", "NCH"),
        precision=jax.lax.Precision.HIGHEST,
    )
    return jnp.maximum(y + shift[None, :, None], 0.0)


if __name__ == "__main__":
    # BasicConv(in_channels=4, out_channels=8, kernel_size=K, ...) — small shapes.
    B, C_in, C_out, T = 2, 4, 8, 16
    eps = 1e-5

    key = jax.random.PRNGKey(0)
    kx, kw, kg, kb, km, kv = jax.random.split(key, 6)
    x = jax.random.normal(kx, (B, C_in, T), dtype=jnp.float32)
    gamma = 1.0 + 0.1 * jax.random.normal(kg, (C_out,), dtype=jnp.float32)
    beta = 0.1 * jax.random.normal(kb, (C_out,), dtype=jnp.float32)
    running_mean = 0.1 * jax.random.normal(km, (C_out,), dtype=jnp.float32)
    running_var = jnp.abs(1.0 + 0.1 * jax.random.normal(kv, (C_out,), dtype=jnp.float32))

    scale = gamma / jnp.sqrt(running_var + eps)
    shift = beta - running_mean * scale

    configs = [
        dict(K=3, stride=1, padding=1, dilation=1, compute_dtype=jnp.bfloat16),
        dict(K=3, stride=2, padding=2, dilation=2, compute_dtype=jnp.bfloat16),
        dict(K=1, stride=1, padding=0, dilation=1, compute_dtype=jnp.bfloat16),
        dict(K=3, stride=1, padding=1, dilation=1, compute_dtype=jnp.float32),
    ]

    for cfg in configs:
        K = cfg["K"]
        weight = 0.2 * jax.random.normal(jax.random.fold_in(kw, K),
                                         (C_out, C_in, K), dtype=jnp.float32)

        out = basic_conv_forward(
            x, weight, gamma, beta, running_mean, running_var,
            stride=cfg["stride"], padding=cfg["padding"],
            dilation=cfg["dilation"], eps=eps,
            compute_dtype=cfg["compute_dtype"],
        )
        out = jax.block_until_ready(out)

        w_eff = weight * scale[:, None, None]
        ref = _reference_fused(x, w_eff, shift, stride=cfg["stride"],
                               padding=cfg["padding"], dilation=cfg["dilation"])
        assert out.shape == ref.shape, (cfg, out.shape, ref.shape)
        # Loose check against full-precision module semantics.
        assert jnp.allclose(out, ref, atol=5e-2, rtol=5e-2), ("f32 ref mismatch", cfg)

        if cfg["compute_dtype"] is jnp.bfloat16:
            # Tight check: same math with bf16-quantized activations/weights,
            # which is exactly what the kernel feeds the MXU.
            x_q = x.astype(jnp.bfloat16).astype(jnp.float32)
            w_q = w_eff.astype(jnp.bfloat16).astype(jnp.float32)
            ref_q = _reference_fused(x_q, w_q, shift, stride=cfg["stride"],
                                     padding=cfg["padding"], dilation=cfg["dilation"])
            assert jnp.allclose(out, ref_q, atol=1e-4, rtol=1e-4), ("quantized ref mismatch", cfg)

    print("KERNEL_OK")
</pallas_src>

<mosaic_0001>
module attributes {stable_mosaic.version = 11 : i64} {
  func.func @_conv_bn_relu_kernel(%arg0: i32, %arg1: i32, %arg2: memref<1x4x128xbf16, #tpu.memory_space<vmem>>, %arg3: memref<1x4x128xbf16, #tpu.memory_space<vmem>>, %arg4: memref<3x8x4xbf16, #tpu.memory_space<vmem>>, %arg5: memref<8x1xf32, #tpu.memory_space<vmem>>, %arg6: memref<1x8x128xf32, #tpu.memory_space<vmem>>, %arg7: memref<4x256xbf16, #tpu.memory_space<vmem>>) attributes {dimension_semantics = [#tpu.dimension_semantics<parallel>, #tpu.dimension_semantics<parallel>], iteration_bounds = array<i64: 2, 1>, scalar_prefetch = 0 : i64, scratch_operands = 1 : i64, tpu.core_type = #tpu.core_type<tc>, window_params = [{transform_indices = @transform_0, window_bounds = array<i64: 1, 4, 128>}, {transform_indices = @transform_1, window_bounds = array<i64: 1, 4, 128>}, {pipeline_mode = #tpu.pipeline_mode<synchronous>, transform_indices = @transform_2, window_bounds = array<i64: 3, 8, 4>}, {pipeline_mode = #tpu.pipeline_mode<synchronous>, transform_indices = @transform_3, window_bounds = array<i64: 8, 1>}, {transform_indices = @transform_4, window_bounds = array<i64: 1, 8, 128>}]} {
    %c0 = arith.constant 0 : index
    %c0_0 = arith.constant 0 : index
    %c0_1 = arith.constant 0 : index
    %0 = vector.load %arg2[%c0, %c0_0, %c0_1] : memref<1x4x128xbf16, #tpu.memory_space<vmem>>, vector<1x4x128xbf16>
    %1 = vector.shape_cast %0 : vector<1x4x128xbf16> to vector<4x128xbf16>
    %c0_2 = arith.constant 0 : index
    %c0_3 = arith.constant 0 : index
    %2 = vector.load %arg7[%c0_2, %c0_3] : memref<4x256xbf16, #tpu.memory_space<vmem>>, vector<4x128xbf16>
    tpu.vector_store %arg7[%c0_2, %c0_3], %1 {strides = array<i32>} : memref<4x256xbf16, #tpu.memory_space<vmem>>, vector<4x128xbf16>,
    %c0_4 = arith.constant 0 : index
    %c0_5 = arith.constant 0 : index
    %c0_6 = arith.constant 0 : index
    %3 = vector.load %arg3[%c0_4, %c0_5, %c0_6] : memref<1x4x128xbf16, #tpu.memory_space<vmem>>, vector<1x4x128xbf16>
    %4 = vector.shape_cast %3 : vector<1x4x128xbf16> to vector<4x128xbf16>
    %c0_7 = arith.constant 0 : index
    %c128 = arith.constant 128 : index
    %5 = vector.load %arg7[%c0_7, %c128] : memref<4x256xbf16, #tpu.memory_space<vmem>>, vector<4x128xbf16>
    tpu.vector_store %arg7[%c0_7, %c128], %4 {strides = array<i32>} : memref<4x256xbf16, #tpu.memory_space<vmem>>, vector<4x128xbf16>,
    %c0_8 = arith.constant 0 : index
    %c0_9 = arith.constant 0 : index
    %6 = vector.load %arg7[%c0_8, %c0_9] : memref<4x256xbf16, #tpu.memory_space<vmem>>, vector<4x128xbf16>
    %c0_10 = arith.constant 0 : index
    %c0_11 = arith.constant 0 : index
    %c0_12 = arith.constant 0 : index
    %7 = vector.load %arg4[%c0_10, %c0_11, %c0_12] : memref<3x8x4xbf16, #tpu.memory_space<vmem>>, vector<1x8x4xbf16>
    %8 = vector.shape_cast %7 : vector<1x8x4xbf16> to vector<8x4xbf16>
    %cst = arith.constant dense<0.000000e+00> : vector<8x128xf32>
    %9 = tpu.matmul %8, %6, %cst {dimension_numbers = #tpu.dot_dimension_numbers<[1], [0], [0], [1], [0, 0, 1, 1], [], []>} : vector<8x4xbf16>, vector<4x128xbf16>, vector<8x128xf32> -> vector<8x128xf32>
    %c0_13 = arith.constant 0 : index
    %c1 = arith.constant 1 : index
    %10 = vector.load %arg7[%c0_13, %c1] : memref<4x256xbf16, #tpu.memory_space<vmem>>, vector<4x128xbf16>
    %c1_14 = arith.constant 1 : index
    %c0_15 = arith.constant 0 : index
    %c0_16 = arith.constant 0 : index
    %11 = vector.load %arg4[%c1_14, %c0_15, %c0_16] : memref<3x8x4xbf16, #tpu.memory_space<vmem>>, vector<1x8x4xbf16>
    %12 = vector.shape_cast %11 : vector<1x8x4xbf16> to vector<8x4xbf16>
    %cst_17 = arith.constant dense<0.000000e+00> : vector<8x128xf32>
    %13 = tpu.matmul %12, %10, %cst_17 {dimension_numbers = #tpu.dot_dimension_numbers<[1], [0], [0], [1], [0, 0, 1, 1], [], []>} : vector<8x4xbf16>, vector<4x128xbf16>, vector<8x128xf32> -> vector<8x128xf32>
    %14 = arith.addf %9, %13 : vector<8x128xf32>
    %c0_18 = arith.constant 0 : index
    %c2 = arith.constant 2 : index
    %15 = vector.load %arg7[%c0_18, %c2] : memref<4x256xbf16, #tpu.memory_space<vmem>>, vector<4x128xbf16>
    %c2_19 = arith.constant 2 : index
    %c0_20 = arith.constant 0 : index
    %c0_21 = arith.constant 0 : index
    %16 = vector.load %arg4[%c2_19, %c0_20, %c0_21] : memref<3x8x4xbf16, #tpu.memory_space<vmem>>, vector<1x8x4xbf16>
    %17 = vector.shape_cast %16 : vector<1x8x4xbf16> to vector<8x4xbf16>
    %cst_22 = arith.constant dense<0.000000e+00> : vector<8x128xf32>
    %18 = tpu.matmul %17, %15, %cst_22 {dimension_numbers = #tpu.dot_dimension_numbers<[1], [0], [0], [1], [0, 0, 1, 1], [], []>} : vector<8x4xbf16>, vector<4x128xbf16>, vector<8x128xf32> -> vector<8x128xf32>
    %19 = arith.addf %14, %18 : vector<8x128xf32>
    %c0_23 = arith.constant 0 : index
    %c0_24 = arith.constant 0 : index
    %20 = vector.load %arg5[%c0_23, %c0_24] : memref<8x1xf32, #tpu.memory_space<vmem>>, vector<8x1xf32>
    %21 = vector.broadcast %20 : vector<8x1xf32> to vector<8x128xf32>
    %22 = arith.addf %19, %21 : vector<8x128xf32>
    %cst_25 = arith.constant 0.000000e+00 : f32
    %23 = vector.broadcast %cst_25 : f32 to vector<8x128xf32>
    %24 = arith.maximumf %22, %23 : vector<8x128xf32>
    %c0_26 = arith.constant 0 : index
    %c0_27 = arith.constant 0 : index
    %c0_28 = arith.constant 0 : index
    %25 = vector.load %arg6[%c0_26, %c0_27, %c0_28] : memref<1x8x128xf32, #tpu.memory_space<vmem>>, vector<1x8x128xf32>
    %26 = vector.shape_cast %25 : vector<1x8x128xf32> to vector<8x128xf32>
    %27 = vector.shape_cast %24 : vector<8x128xf32> to vector<1x8x128xf32>
    tpu.vector_store %arg6[%c0_26, %c0_27, %c0_28], %27 {strides = array<i32>} : memref<1x8x128xf32, #tpu.memory_space<vmem>>, vector<1x8x128xf32>,
    return
  }
  func.func @transform_0(%arg0: i32, %arg1: i32) -> (i32, i32, i32) {
    %c0_i32 = arith.constant 0 : i32
    %c0_i32_0 = arith.constant 0 : i32
    return %arg0, %c0_i32, %arg1 : i32, i32, i32
  }
  func.func @transform_1(%arg0: i32, %arg1: i32) -> (i32, i32, i32) {
    %c1_i32 = arith.constant 1 : i32
    %0 = arith.addi %arg1, %c1_i32 : i32
    %c1_i32_0 = arith.constant 1 : i32
    %1 = arith.muli %0, %c1_i32_0 : i32
    %c0_i32 = arith.constant 0 : i32
    %c0_i32_1 = arith.constant 0 : i32
    return %arg0, %c0_i32, %1 : i32, i32, i32
  }
  func.func @transform_2(%arg0: i32, %arg1: i32) -> (i32, i32, i32) {
    %c0_i32 = arith.constant 0 : i32
    %c0_i32_0 = arith.constant 0 : i32
    %c0_i32_1 = arith.constant 0 : i32
    %c0_i32_2 = arith.constant 0 : i32
    return %c0_i32, %c0_i32_0, %c0_i32_1 : i32, i32, i32
  }
  func.func @transform_3(%arg0: i32, %arg1: i32) -> (i32, i32) {
    %c0_i32 = arith.constant 0 : i32
    %c0_i32_0 = arith.constant 0 : i32
    %c0_i32_1 = arith.constant 0 : i32
    return %c0_i32, %c0_i32_0 : i32, i32
  }
  func.func @transform_4(%arg0: i32, %arg1: i32) -> (i32, i32, i32) {
    %c0_i32 = arith.constant 0 : i32
    %c0_i32_0 = arith.constant 0 : i32
    return %arg0, %c0_i32, %arg1 : i32, i32, i32
  }
}

</mosaic_0001>

<bundles_post_ra>
// kernel: tpu_custom_call.1
= control target key start
LH: loop header
LB: loop body
LE: loop exit
PB: predicated region body
PF: predicated region fallthrough
CT: control target
= control target key end

     0   :  { %9 = vsyncpa [#allocation4], 0  ;;  %s907_s0 = inlined_call_operand.vmem [shape: bf16[2,4,256], index: 0, kind: input, shape index: {}]   ;;  %s908_s1 = inlined_call_operand.vmem [shape: bf16[2,4,256], index: 1, kind: input, shape index: {}]   ;;  %s909_s2 = inlined_call_operand.vmem [shape: bf16[3,8,4], index: 2, kind: input, shape index: {}]   ;;  %s910_s3 = inlined_call_operand.vmem [shape: f32[8,1], index: 3, kind: input, shape index: {}]   ;;  %s911_s4 = inlined_call_operand.hbm [shape: f32[2,8,128], index: 4, kind: output, shape index: {}]  }
   0x1   :  { %11 = vsyncpa [#allocation4 + $0x1], 0  ;;  %s778_s15 = smov 0   ;;  %s780_s16 = smov 0  }
   0x2   :  { %s782_s17 = smov 0   ;;  %s784_s18 = smov 0  }
   0x3   :  { %s786_s19 = smov 0   ;;  %s788_s20 = smov 0  }
   0x4 LB: > { %s559_s21 = sadd.s32 4294967295, %s745_s20   ;;  %s560_s22 = sadd.s32 4294967294, %s745_s20   ;;  %s745_s20 = sphi %s788_s20, %s17_s20   ;;  %s741_s19 = sphi %s786_s19, %s918_s19   ;;  %s737_s18 = sphi %s784_s18, %s917_s18   ;;  %s733_s17 = sphi %s782_s17, %s916_s17   ;;  %s729_s16 = sphi %s780_s16, %s915_s16   ;;  %s725_s15 = sphi %s778_s15, %s914_s15  }
   0x5   : > { %s29_s23 = sadd.s32 1, %s741_s19  ;;  %s138_s24 = sadd.s32 1, %s733_s17 }
   0x6   : > { %p31_p0 = scmp.ge.s32.totalorder %s29_s23, 2  ;;  %p148_p1 = scmp.ne.s32.totalorder %s733_s17, %s729_s16 }
   0x7   : > { %p149_p2 = scmp.eq.s32.totalorder %s559_s21, 1  ;;  %p154_p3 = scmp.ne.s32.totalorder %s729_s16, %s725_s15 }
   0x8   : > { %s920_s23 = smov (%p31_p0, %s29_s23), 0  ;;  %p155_p5 = scmp.eq.s32.totalorder %s560_s22, 1 }
   0x9   : > { %p818_p4 = por %p149_p2, %p148_p1  ;;  %s133_s26 = ssub.s32 %s741_s19, %s920_s23 }
   0xa   : > { %p563_p6 = scmp.ge.s32.totalorder %s745_s20, 1  ;;  %p136_p7 = scmp.eq.s32.totalorder %s133_s26, 0 }
   0xb   : > { %p825_p8 = por %p155_p5, %p154_p3  ;;  %p203_p9 = scmp.lt.s32.totalorder %s745_s20, 3 }
   0xc   : > { %s831_s28 = scalar_select %p136_p7, %s733_s17, %s138_s24  }
   0xd   : > { %p204_p10 = pnand %p563_p6, %p203_p9 }
   0xe   : > { %p241_p11 = scmp.lt.s32.totalorder (!%p204_p10), %s737_s18, 1  ;;  %s749_s12 = smov (!%p204_p10), 126  }
   0xf   : > { %207 = sbr.rel (%p204_p10) target bundleno = 378 (0x17a), region = 36  ;;  %s750_s13 = smov (!%p204_p10), 127  }
  0x10   : > { %s238_s6 = sand.u32 (!%p204_p10), 1, %s729_s16  }
  0x11   : > { %s453_s14 = scalar_lea.sflag (!%p204_p10), [#allocation4], %s238_s6 }
  0x14   : > { %s242_s29 = scalar_select %p241_p11, %s737_s18, 1  ;;  %v747_v2 = vmov 0.0   ;;  %vm748_vm0 = vmmov 0   ;;  %vm288_vm1 = vcmask 1041408   ;;  %vm284_vm2 = vcmask 31744   ;;  %v443_v9 = vld [vmem:[%s910_s3] sm:$0xff] }
  0x15   : > { %590 = vmatprep.subr.bf16.mxu0 %v747_v2  ;;  %596 = vmatprep.subr.bf16.mxu1 %v747_v2  ;;  %v265_v7 = vld [vmem:[%s909_s2] sm:$0xf]  ;;  %v751_v8 = vmov 0   ;;  %vm394_vm3 = vcmask 1031168   ;;  %vm282_vm4 = vcmask 1039360  }
  0x16   : > { %s580_s30 = sshll.u32 %s242_s29, 2  ;;  %592 = vmatprep.mubr.msk.bf16.mxu0 %vm748_vm0, %v747_v2  ;;  %598 = vmatprep.mubr.msk.bf16.mxu1 %vm748_vm0, %v747_v2  ;;  %v569_v17 = vld [vmem:[%s909_s2 + $0x4] sm:$0xf]  ;;  %v573_v19 = vld [vmem:[%s909_s2 + $0x8] sm:$0xf] }
  0x17   : > { %s248_s7 = scalar_lea.vmem %s907_s0, %s580_s30  ;;  %s582_s8 = sadd.s32 2, %s580_s30  ;;  %668 = vset.pattern.permute.xlu0 %v751_v8 }
  0x18   : > { %s257_s11 = scalar_lea.vmem %s908_s1, %s582_s8  ;;  %v260_v0 = vld [vmem:[%s248_s7] sm:$0x3]  ;;  %s564_s7 = sshll.u32 %s238_s6, 3 }
  0x19   : > { %261 = vst [vmem:[#allocation2] sm:$0x3] %v260_v0  ;;  %v262_v1 = vld [vmem:[%s257_s11] sm:$0x3]  ;;  %s577_s8 = sshll.u32 %s737_s18, 7  ;;  %s240_s9 = scalar_lea.vmem [#allocation3], %s564_s7 }
  0x1a   : > { %263 = vst [vmem:[#allocation2 + $0x2] sm:$0x3] %v262_v1  ;;  %s467_s10 = sshll.u32 %s240_s9, 4  ;;  %s752_s18 = smov [#allocation3]   ;;  %s468_s10 = int_to_ptr.vmem [resolvable:$true] %s467_s10 }
  0x1b   : > { %s669_s21 = scalar_lea.vmem %s468_s10, 128  ;;  %s673_s22 = sshll.u32 %s752_s18, 4  ;;  %s674_s22 = int_to_ptr.vmem [resolvable:$false] %s673_s22 }
  0x1c   : > { %p670_p12 = scmp.ne.s32.totalorder %s468_s10, %s669_s21  ;;  %s675_s24 = scalar_lea.vmem %s674_s22, 256 }
  0x1d   : > { %p676_p1 = scmp.lt.s32.totalorder %s468_s10, %s674_s22  ;;  %p677_p2 = scmp.lt.s32.totalorder %s675_s24, %s669_s21 }
  0x1e   : > { %p671_p13 = pnand %p670_p12, %p818_p4 }
  0x1f   : > { %p678_p3 = por %p677_p2, %p676_p1 }
  0x20   : > { %v264_v3 = vld [vmem:[#allocation2] sm:$0x3]  ;;  %p672_p0 = pneg %p671_p13 }
  0x21   : > { %v574_v4 = vld.sshfl [vmem:[#allocation2] sm:$0x33 pattern:$0x76325410]  ;;  %v336_v5 = vsel %vm288_vm1, %v264_v3, 0 }
  0x22   : > { %390 = vrot.lane.b32.xlu1 %v574_v4, %s749_s12  ;;  %v389_v6 = vcombine.high %v574_v4, %v574_v4  ;;  %278 = vrot.lane.b32.xlu0 %v574_v4, %s750_s13  ;;  %p679_p5 = pnand %p678_p3, %p672_p0 }
  0x23   : > { %597 = vmatpush3.bf16.msra.mxu1 %v336_v5 }
  0x26   : > { %392 = vrot.lane.b32.xlu1 %v389_v6, %s749_s12  ;;  %280 = vrot.lane.b32.xlu0 %v389_v6, %s750_s13  ;;  %s867_s13 = scalar_lea.hbm %s911_s4, %s577_s8 }
  0x27   : > { %599 = vmatmul.mubr.msk.bf16.vlgmr.msra.gmra.mxu1 %vm284_vm2, %v265_v7 }
  0x2a   : > { %446 = vperm.xlu0 %668, %v443_v9  }
  0x94   : > { %v391_v10 = vpop.permute.xlu1 %390  ;;  %v279_v11 = vpop.permute.xlu0 %278 }
  0x98   : > { %v393_v12 = vpop.permute.xlu1 %392  ;;  %v281_v13 = vpop.permute.xlu0 %280 }
  0x99   : > { %v395_v14 = vsel %vm394_vm3, %v391_v10, %v393_v12  ;;  %v283_v15 = vsel %vm282_vm4, %v279_v11, %v281_v13 }
  0x9a   : > { %v290_v16 = vsel %vm288_vm1, %v283_v15, 0  ;;  %v400_v18 = vsel %vm288_vm1, %v395_v14, 0 }
  0x9b   : > { %591 = vmatpush3.bf16.msra.mxu0 %v290_v16 }
  0x9c   : > { %602 = vmatprep.subr.bf16.mxu0 %v747_v2 }
  0x9e   : > { %593 = vmatmul.mubr.msk.bf16.vlgmr.msra.gmra.mxu0 %vm284_vm2, %v569_v17 }
  0x9f   : > { %603 = vmatpush3.bf16.msra.mxu0 %v400_v18  ;;  %604 = vmatprep.mubr.msk.bf16.mxu0 %vm748_vm0, %v747_v2 }
  0xa5   : > { %v447_v30 = vpop.permute.xlu0 %446 }
  0xa6   : > { %605 = vmatmul.mubr.msk.bf16.vlgmr.msra.gmra.mxu0 %vm284_vm2, %v573_v19 }
  0xe7   : > { %v372_v20 = vpop.f32.mrf.mxu1 }
  0xe9   : > { %v600_v21 = vpop.f32.mrf.mxu1 }
  0xeb   : > { %v375_v22 = vpop.f32.mrf.mxu1 }
  0xed   : > { %v601_v23 = vpop.f32.mrf.mxu1 }
 0x15e   : > { %v326_v24 = vpop.f32.mrf.mxu0 }
 0x15f   : > { %v373_v28 = vadd.f32 %v372_v20, %v326_v24 }
 0x160   : > { %v594_v25 = vpop.f32.mrf.mxu0 }
 0x162   : > { %v329_v26 = vpop.f32.mrf.mxu0 }
 0x164   : > { %v595_v27 = vpop.f32.mrf.mxu0 }
 0x166   : > { %v436_v29 = vpop.f32.mrf.mxu0 }
 0x167   : > { %v442_v31 = vadd.f32 %v436_v29, %v373_v28 }
 0x168   : > { %v606_v32 = vpop.f32.mrf.mxu0 }
 0x169   : > { %v449_v33 = vadd.f32 %v447_v30, %v442_v31 }
 0x16a   : > { %v439_v34 = vpop.f32.mrf.mxu0 }
 0x16b   : > { %v450_v35 = vmax.f32 %v449_v33, 0.0 }
 0x16c   : > { %v607_v36 = vpop.f32.mrf.mxu0 }
 0x16d   : > { %451 = vst [vmem:[%s240_s9] sm:$0xff] %v450_v35 }
 0x16e   : > { %682 = shalt.err (!%p679_p5)
}
 0x16f   : > { %s683_s26 = scalar_lea.hbm %s867_s13, 128  ;;  %s687_s5 = scalar_lea.hbm %s911_s4, 256 }
 0x170   : > { %p684_p6 = scmp.ne.s32.totalorder %s867_s13, %s683_s26  ;;  %p688_p10 = scmp.lt.s32.totalorder %s867_s13, %s911_s4 }
 0x171   : > { %p689_p11 = scmp.lt.s32.totalorder %s687_s5, %s683_s26 }
 0x172   : > { %p685_p7 = pnand %p684_p6, %p818_p4 }
 0x173   : > { %p690_p12 = por %p689_p11, %p688_p10 }
 0x174   : > { %p686_p9 = pneg %p685_p7 }
 0x176   : > { %p691_p13 = pnand %p690_p12, %p686_p9 }
 0x178   : > { %694 = shalt.err (!%p691_p13)
}
 0x179   : > { %608 = dma.vmem_to_hbm [thread:$0]  (%p818_p4), %s468_s10, 128, %s867_s13, %s453_s14  }
 0x17a PF: > { %p614_p0 = scmp.ge.s32.totalorder %s745_s20, 2  ;;  %s479_s8 = sand.u32 1, %s725_s15  }
 0x17b   : > { %s480_s9 = scalar_lea.sflag [#allocation4], %s479_s8 }
 0x17c   : > { %p611_p1 = pnand %p614_p0, %p825_p8 }
 0x17e   : > { %p612_p2 = pneg %p611_p1 }
 0x180   : > { %720 = dma.done.wait (%p612_p2), %s480_s9, 128  }
 0x181   : > { %722 = vsyncadd (%p612_p2), %s480_s9, 4294967168  ;;  %s17_s20 = sadd.s32 1, %s745_s20   ;;  %s914_s15 = smov %s729_s16 }
 0x182   : > { %p14_p3 = scmp.ge.s32.totalorder %s17_s20, 4   ;;  %s915_s16 = smov %s733_s17 }
 0x183   : > { %s916_s17 = smov %s831_s28  ;;  %s917_s18 = smov %s741_s19 }
 0x184   : > { %s918_s19 = smov %s920_s23  ;;  %16 = sbr.rel (!%p14_p3) target bundleno = 4 (0x4), region = 76 }
 0x189   :  { %485 = vsyncpa [#allocation4], 1 }
 0x18a   :  { %487 = vsyncpa [#allocation4 + $0x1], 1 }

</bundles_post_ra>
